<compile_context>
chip_gen: v5e
topology: v5e:2x2
jax: 0.10.0
libtpu: 0.0.40
codegen_flags: <defaults>
</compile_context>

<pallas_src>
import jax
import jax.numpy as jnp
from jax.experimental import pallas as pl
from jax.experimental.pallas import tpu as pltpu

Y_LO, Y_HI = 0.0, 1.0  # self.y_range = [0, 1]


def _head_kernel_single(x_ref, w_ref, b_ref, o_ref):
    """(TM x K) @ (K x O_pad) full matmul; bias + sigmoid fused, no scratch."""
    y = jnp.dot(x_ref[...], w_ref[...], preferred_element_type=jnp.float32)
    y = y + b_ref[...]
    # SigmoidRange(lo, hi): sigmoid(y) * (hi - lo) + lo  (here plain sigmoid)
    y = jax.nn.sigmoid(y) * (Y_HI - Y_LO) + Y_LO
    o_ref[...] = y.astype(o_ref.dtype)


def _head_kernel_reduce(x_ref, w_ref, b_ref, o_ref, acc_ref):
    """(TM x TK) @ (TK x O_pad) partial matmul; bias + sigmoid on last K step."""
    k = pl.program_id(1)

    @pl.when(k == 0)
    def _():
        acc_ref[...] = jnp.zeros_like(acc_ref)

    acc_ref[...] += jnp.dot(x_ref[...], w_ref[...],
                            preferred_element_type=jnp.float32)

    @pl.when(k == pl.num_programs(1) - 1)
    def _():
        y = acc_ref[...] + b_ref[...]
        y = jax.nn.sigmoid(y) * (Y_HI - Y_LO) + Y_LO
        o_ref[...] = y.astype(o_ref.dtype)


def _pick_tk(feat, o_pad, w_itemsize, wblock_budget):
    """Largest lane-aligned K tile dividing feat whose weight block fits budget."""
    for tk in (4096, 2048, 1024, 512, 384, 256, 128):
        if feat % tk == 0 and tk * o_pad * w_itemsize <= wblock_budget:
            return tk
    return feat  # no aligned divisor -> single K step covering the full extent


def regression_head_forward(x, weight, bias, n_samples, *, batch_tile=128,
                            single_k_budget=8 << 20, wblock_budget=4 << 20):
    """x: [bs, num_patch, d_model]; weight: [n_samples*d_model, output_dim];
    bias: [output_dim]. Returns [bs, output_dim]."""
    bs, num_patch, d_model = x.shape
    feat = n_samples * d_model
    output_dim = weight.shape[1]
    assert weight.shape[0] == feat

    x_bytes = jnp.dtype(x.dtype).itemsize
    w_bytes = jnp.dtype(weight.dtype).itemsize

    # --- N (output) padding to a lane-dense multiple of 128 -----------------
    o_pad = max(128, pl.cdiv(output_dim, 128) * 128)
    if o_pad != output_dim:
        weight = jnp.pad(weight, ((0, 0), (0, o_pad - output_dim)))
        bias = jnp.pad(bias, (0, o_pad - output_dim))
    b2d = bias.reshape(1, o_pad)

    # --- K tiling ------------------------------------------------------------
    if feat * o_pad * w_bytes <= single_k_budget:
        tk = feat                                   # whole weight in one block
    else:
        tk = _pick_tk(feat, o_pad, w_bytes, wblock_budget)
    num_k = feat // tk
    single_k = num_k == 1

    # --- lastN window: copy-free addressing when K-tile aligned --------------
    offset_elems = (num_patch - n_samples) * d_model  # start of lastN window
    if n_samples == num_patch:
        x2d = x.reshape(bs, feat)
        k_base = 0
    elif offset_elems % tk == 0 and tk % 128 == 0:
        # Copy-free path: flatten the whole sequence (contiguous reshape, no
        # data movement) and start the K index_map at the window offset.
        x2d = x.reshape(bs, num_patch * d_model)
        k_base = offset_elems // tk
    else:
        # Fallback: materialize the lastN slice (one extra HBM copy).
        x2d = x[:, -n_samples:, :].reshape(bs, feat)
        k_base = 0
    # TODO(synk): dropout is identity in eval/inference; training-mode dropout omitted.

    tm = min(batch_tile, bs)
    num_m = pl.cdiv(bs, tm)

    cost = pl.CostEstimate(
        flops=2 * bs * feat * o_pad,
        transcendentals=bs * o_pad,
        bytes_accessed=(bs * feat * x_bytes + feat * o_pad * w_bytes
                        + o_pad * w_bytes + bs * o_pad * x_bytes),
    )

    # VMEM footprint (double-buffered inputs/outputs + accumulator) + headroom.
    need = (2 * tm * tk * x_bytes + 2 * tk * o_pad * w_bytes + 2 * o_pad * w_bytes
            + 2 * tm * o_pad * x_bytes + tm * o_pad * 4)
    vmem_limit = min(48 << 20, max(16 << 20, int(need * 1.5)))

    if single_k:
        out = pl.pallas_call(
            _head_kernel_single,
            out_shape=jax.ShapeDtypeStruct((bs, o_pad), x.dtype),
            grid_spec=pltpu.PrefetchScalarGridSpec(
                num_scalar_prefetch=0,
                grid=(num_m,),
                in_specs=[
                    pl.BlockSpec((tm, tk), lambda i: (i, k_base)),
                    pl.BlockSpec((tk, o_pad), lambda i: (0, 0)),
                    pl.BlockSpec((1, o_pad), lambda i: (0, 0)),
                ],
                out_specs=pl.BlockSpec((tm, o_pad), lambda i: (i, 0)),
            ),
            compiler_params=pltpu.CompilerParams(
                dimension_semantics=("parallel",),
                vmem_limit_bytes=vmem_limit,
            ),
            cost_estimate=cost,
        )(x2d, weight, b2d)
    else:
        out = pl.pallas_call(
            _head_kernel_reduce,
            out_shape=jax.ShapeDtypeStruct((bs, o_pad), x.dtype),
            grid_spec=pltpu.PrefetchScalarGridSpec(
                num_scalar_prefetch=0,
                grid=(num_m, num_k),
                in_specs=[
                    pl.BlockSpec((tm, tk), lambda i, k: (i, k_base + k)),
                    pl.BlockSpec((tk, o_pad), lambda i, k: (k, 0)),
                    pl.BlockSpec((1, o_pad), lambda i, k: (0, 0)),
                ],
                out_specs=pl.BlockSpec((tm, o_pad), lambda i, k: (i, 0)),
                scratch_shapes=[pltpu.VMEM((tm, o_pad), jnp.float32)],
            ),
            compiler_params=pltpu.CompilerParams(
                dimension_semantics=("parallel", "arbitrary"),
                vmem_limit_bytes=vmem_limit,
            ),
            cost_estimate=cost,
        )(x2d, weight, b2d)

    # Slice the real output columns back out of the lane-padded result.
    return out[:, :output_dim]


def _reference(x, weight, bias, n_samples):
    bs = x.shape[0]
    feat = weight.shape[0]
    x_flat = x[:, -n_samples:, :].reshape(bs, feat)
    return jax.nn.sigmoid(x_flat @ weight + bias) * (Y_HI - Y_LO) + Y_LO


if __name__ == "__main__":
    key = jax.random.PRNGKey(0)

    # --- Test 1: single-K fused path (small head, copy-free lastN) ----------
    bs, num_patch, d_model, n_samples, output_dim = 2, 8, 32, 4, 8
    feat = n_samples * d_model
    kx, kw, kb, key = jax.random.split(key, 4)
    x = jax.random.normal(kx, (bs, num_patch, d_model), dtype=jnp.float32)
    bound = 1.0 / jnp.sqrt(jnp.float32(feat))
    weight = jax.random.uniform(kw, (feat, output_dim), dtype=jnp.float32,
                                minval=-bound, maxval=bound)
    bias = jax.random.uniform(kb, (output_dim,), dtype=jnp.float32,
                              minval=-bound, maxval=bound)
    y = jax.block_until_ready(regression_head_forward(x, weight, bias, n_samples))
    y_ref = _reference(x, weight, bias, n_samples)
    assert y.shape == (bs, output_dim)
    assert jnp.allclose(y, y_ref, atol=1e-5, rtol=1e-5)

    # --- Test 2: K-reduction path (forced), odd batch, padded output --------
    bs, num_patch, d_model, n_samples, output_dim = 3, 8, 64, 4, 5
    feat = n_samples * d_model
    kx, kw, kb, key = jax.random.split(key, 4)
    x = jax.random.normal(kx, (bs, num_patch, d_model), dtype=jnp.float32)
    bound = 1.0 / jnp.sqrt(jnp.float32(feat))
    weight = jax.random.uniform(kw, (feat, output_dim), dtype=jnp.float32,
                                minval=-bound, maxval=bound)
    bias = jax.random.uniform(kb, (output_dim,), dtype=jnp.float32,
                              minval=-bound, maxval=bound)
    y2 = jax.block_until_ready(
        regression_head_forward(x, weight, bias, n_samples, single_k_budget=0))
    y2_ref = _reference(x, weight, bias, n_samples)
    assert y2.shape == (bs, output_dim)
    assert jnp.allclose(y2, y2_ref, atol=1e-5, rtol=1e-5)

    print("KERNEL_OK")
</pallas_src>

<mosaic_0001>
module attributes {stable_mosaic.version = 11 : i64} {
  func.func @_head_kernel_single(%arg0: i32, %arg1: memref<2x128xf32, #tpu.memory_space<vmem>>, %arg2: memref<128x128xf32, #tpu.memory_space<vmem>>, %arg3: memref<1x128xf32, #tpu.memory_space<vmem>>, %arg4: memref<2x128xf32, #tpu.memory_space<vmem>>) attributes {dimension_semantics = [#tpu.dimension_semantics<parallel>], iteration_bounds = array<i64: 1>, scalar_prefetch = 0 : i64, scratch_operands = 0 : i64, tpu.core_type = #tpu.core_type<tc>, window_params = [{transform_indices = @transform_0, window_bounds = array<i64: 2, 128>}, {pipeline_mode = #tpu.pipeline_mode<synchronous>, transform_indices = @transform_1, window_bounds = array<i64: 128, 128>}, {pipeline_mode = #tpu.pipeline_mode<synchronous>, transform_indices = @transform_2, window_bounds = array<i64: 1, 128>}, {transform_indices = @transform_3, window_bounds = array<i64: 2, 128>}]} {
    %c0 = arith.constant 0 : index
    %c0_0 = arith.constant 0 : index
    %0 = vector.load %arg1[%c0, %c0_0] : memref<2x128xf32, #tpu.memory_space<vmem>>, vector<2x128xf32>
    %c0_1 = arith.constant 0 : index
    %c0_2 = arith.constant 0 : index
    %1 = vector.load %arg2[%c0_1, %c0_2] : memref<128x128xf32, #tpu.memory_space<vmem>>, vector<128x128xf32>
    %cst = arith.constant dense<0.000000e+00> : vector<2x128xf32>
    %2 = tpu.matmul %0, %1, %cst {dimension_numbers = #tpu.dot_dimension_numbers<[1], [0], [0], [1], [0, 0, 1, 1], [], []>} : vector<2x128xf32>, vector<128x128xf32>, vector<2x128xf32> -> vector<2x128xf32>
    %c0_3 = arith.constant 0 : index
    %c0_4 = arith.constant 0 : index
    %3 = vector.load %arg3[%c0_3, %c0_4] : memref<1x128xf32, #tpu.memory_space<vmem>>, vector<1x128xf32>
    %4 = vector.broadcast %3 : vector<1x128xf32> to vector<2x128xf32>
    %5 = arith.addf %2, %4 : vector<2x128xf32>
    %6 = arith.negf %5 : vector<2x128xf32>
    %7 = math.exp %6 : vector<2x128xf32>
    %cst_5 = arith.constant 1.000000e+00 : f32
    %8 = vector.broadcast %cst_5 : f32 to vector<2x128xf32>
    %9 = arith.addf %8, %7 : vector<2x128xf32>
    %10 = arith.divf %8, %9 : vector<2x128xf32>
    %cst_6 = arith.constant 1.000000e+00 : f32
    %11 = vector.broadcast %cst_6 : f32 to vector<2x128xf32>
    %12 = arith.mulf %10, %11 : vector<2x128xf32>
    %cst_7 = arith.constant 0.000000e+00 : f32
    %13 = vector.broadcast %cst_7 : f32 to vector<2x128xf32>
    %14 = arith.addf %12, %13 : vector<2x128xf32>
    %c0_8 = arith.constant 0 : index
    %c0_9 = arith.constant 0 : index
    %15 = vector.load %arg4[%c0_8, %c0_9] : memref<2x128xf32, #tpu.memory_space<vmem>>, vector<2x128xf32>
    tpu.vector_store %arg4[%c0_8, %c0_9], %14 {strides = array<i32>} : memref<2x128xf32, #tpu.memory_space<vmem>>, vector<2x128xf32>,
    return
  }
  func.func @transform_0(%arg0: i32) -> (i32, i32) {
    %c1_i32 = arith.constant 1 : i32
    %c0_i32 = arith.constant 0 : i32
    return %arg0, %c1_i32 : i32, i32
  }
  func.func @transform_1(%arg0: i32) -> (i32, i32) {
    %c0_i32 = arith.constant 0 : i32
    %c0_i32_0 = arith.constant 0 : i32
    %c0_i32_1 = arith.constant 0 : i32
    return %c0_i32, %c0_i32_0 : i32, i32
  }
  func.func @transform_2(%arg0: i32) -> (i32, i32) {
    %c0_i32 = arith.constant 0 : i32
    %c0_i32_0 = arith.constant 0 : i32
    %c0_i32_1 = arith.constant 0 : i32
    return %c0_i32, %c0_i32_0 : i32, i32
  }
  func.func @transform_3(%arg0: i32) -> (i32, i32) {
    %c0_i32 = arith.constant 0 : i32
    %c0_i32_0 = arith.constant 0 : i32
    return %arg0, %c0_i32 : i32, i32
  }
}

</mosaic_0001>

<bundles_post_ra>
// kernel: tpu_custom_call.1
= control target key start
LH: loop header
LB: loop body
LE: loop exit
PB: predicated region body
PF: predicated region fallthrough
CT: control target
= control target key end

     0   :  { %8 = vsyncpa [#allocation3], 0  ;;  %s252_s0 = inlined_call_operand.hbm [shape: f32[2,256], index: 0, kind: input, shape index: {}]   ;;  %s253_s1 = inlined_call_operand.hbm [shape: f32[128,128], index: 1, kind: input, shape index: {}]   ;;  %s254_s2 = inlined_call_operand.vmem [shape: f32[1,128], index: 2, kind: input, shape index: {}]   ;;  %s255_s3 = inlined_call_operand.hbm [shape: f32[2,128], index: 3, kind: output, shape index: {}]  }
   0x1   :  { %9 = vsyncpa [#allocation6], 0 }
   0x2   :  { %10 = vsyncpa [#allocation4], 0  ;;  %s15_s14 = scalar_lea.hbm %s252_s0, 2  ;;  %s215_s16 = smov [#allocation2]  }
   0x3   :  { %s17_s15 = sshll.u32 %s15_s14, 4  ;;  %s19_s17 = sshll.u32 %s215_s16, 4  ;;  %s18_s15 = int_to_ptr.hbm [resolvable:$true] %s17_s15  ;;  %s20_s17 = int_to_ptr.vmem [resolvable:$true] %s19_s17 }
   0x4   :  { %22 = dma.hbm_to_vmem [thread:$0]  %s18_s15, 32, %s20_s17, [#allocation3]  }
   0x5   :  { %s27_s20 = sshll.u32 %s253_s1, 4  ;;  %s216_s21 = smov [#allocation5]   ;;  %s28_s20 = int_to_ptr.hbm [resolvable:$true] %s27_s20 }
   0x6   :  { %s29_s22 = sshll.u32 %s216_s21, 4  ;;  %s217_s23 = smov 128   ;;  %s30_s22 = int_to_ptr.vmem [resolvable:$true] %s29_s22 }
   0x7   :  { %s218_s24 = smov 8  }
   0x8   :  { %35 = dma.hbm_to_vmem [thread:$0]  %s28_s20, 2048, %s30_s22, [#allocation6], %s217_s23, %s217_s23, %s218_s24  }
   0x9   :  { %209 = dma.done.wait [#allocation3], 32  }
   0xa   :  { %210 = vsyncadd [#allocation3], 4294967264 }
   0xb   :  { %211 = dma.done.wait [#allocation6], 2048  }
   0xc   :  { %212 = vsyncadd [#allocation6], 4294965248  ;;  %v62_v0 = vld [vmem:[#allocation5 + $0x78] sm:$0xff]  ;;  %v61_v1 = vld [vmem:[#allocation5 + $0x70] sm:$0xff]  ;;  %s219_s25 = smov [#allocation7]  }
   0xd   :  { %67 = vmatpush.msra.mxu0 %v62_v0  ;;  %v60_v2 = vld [vmem:[#allocation5 + $0x68] sm:$0xff]  ;;  %v59_v3 = vld [vmem:[#allocation5 + $0x60] sm:$0xff]  ;;  %v58_v4 = vld [vmem:[#allocation5 + $0x58] sm:$0xff]  ;;  %s113_s26 = sshll.u32 %s219_s25, 4  ;;  %s114_s26 = int_to_ptr.vmem [resolvable:$true] %s113_s26 }
   0xe   :  { %v57_v5 = vld [vmem:[#allocation5 + $0x50] sm:$0xff]  ;;  %v56_v6 = vld [vmem:[#allocation5 + $0x48] sm:$0xff]  ;;  %v55_v7 = vld [vmem:[#allocation5 + $0x40] sm:$0xff] }
   0xf   :  { %68 = vmatpush.msra.mxu0 %v61_v1  ;;  %v54_v8 = vld [vmem:[#allocation5 + $0x38] sm:$0xff]  ;;  %v53_v9 = vld [vmem:[#allocation5 + $0x30] sm:$0xff]  ;;  %v52_v10 = vld [vmem:[#allocation5 + $0x28] sm:$0xff] }
  0x10   :  { %v51_v11 = vld [vmem:[#allocation5 + $0x20] sm:$0xff]  ;;  %v50_v12 = vld [vmem:[#allocation5 + $0x18] sm:$0xff]  ;;  %v49_v13 = vld [vmem:[#allocation5 + $0x10] sm:$0xff] }
  0x11   :  { %69 = vmatpush.msra.mxu0 %v60_v2  ;;  %v48_v14 = vld [vmem:[#allocation5 + $0x8] sm:$0xff]  ;;  %v47_v15 = vld [vmem:[#allocation5] sm:$0xff]  ;;  %v46_v16 = vld [vmem:[#allocation2] sm:$0x3] }
  0x12   :  { %v132_v17 = vld [vmem:[%s254_s2] ss:$0 sm:$0xff]  ;;  %s115_s2 = sshll.u32 %s255_s3, 4  ;;  %s116_s2 = int_to_ptr.hbm [resolvable:$true] %s115_s2 }
  0x13   :  { %70 = vmatpush.msra.mxu0 %v59_v3 }
  0x15   :  { %71 = vmatpush.msra.mxu0 %v58_v4 }
  0x17   :  { %72 = vmatpush.msra.mxu0 %v57_v5 }
  0x19   :  { %73 = vmatpush.msra.mxu0 %v56_v6 }
  0x1b   :  { %74 = vmatpush.msra.mxu0 %v55_v7 }
  0x1d   :  { %75 = vmatpush.msra.mxu0 %v54_v8 }
  0x1f   :  { %76 = vmatpush.msra.mxu0 %v53_v9 }
  0x21   :  { %77 = vmatpush.msra.mxu0 %v52_v10 }
  0x23   :  { %78 = vmatpush.msra.mxu0 %v51_v11 }
  0x25   :  { %79 = vmatpush.msra.mxu0 %v50_v12 }
  0x27   :  { %80 = vmatpush.msra.mxu0 %v49_v13 }
  0x29   :  { %81 = vmatpush.msra.mxu0 %v48_v14 }
  0x2b   :  { %82 = vmatpush.msra.mxu0 %v47_v15 }
  0x2c   :  { %83 = vmatmul.f32.vlgmr.msra.gmra.mxu0 %v46_v16 }
  0xa9   :  { %v84_v18 = vpop.f32.mrf.mxu0 }
  0xaa   :  { %v85_v19 = vadd.f32 %v132_v17, %v84_v18 }
  0xac   :  { %v126_v20 = vmul.f32 -1.442695, %v85_v19 }
  0xae   :  { %133 = vpow2.f32 %v126_v20 }
  0xb4   :  { %v134_v21 = vpop.eup %133 }
  0xb5   :  { %v90_v22 = vadd.f32 1.0, %v134_v21 }
  0xb7   :  { %135 = vrcp.f32 %v90_v22  ;;  %v102_v26 = vand.u32 2147483648, %v90_v22  ;;  %v100_v28 = vand.u32 2147483647, %v90_v22  ;;  %vm96_vm1 = vweird.f32 %v90_v22 }
  0xb9   :  { %v103_v30 = vor.u32 1.1754944e-38, %v102_v26  ;;  %vm101_vm3 = vcmp.eq.f32.partialorder %v100_v28, 8.507059e+37 }
  0xbd   :  { %v136_v23 = vpop.eup %135 }
  0xbe   :  { %v92_v24 = vmul.f32 %v136_v23, %v90_v22  ;;  %vm97_vm0 = vweird.f32 %v136_v23 }
  0xbf   :  { %vm98_vm2 = vmor %vm96_vm1, %vm97_vm0 }
  0xc0   :  { %v93_v25 = vsub.f32 1.0, %v92_v24 }
  0xc2   :  { %v94_v27 = vmul.f32 %v136_v23, %v93_v25 }
  0xc4   :  { %v95_v29 = vadd.f32 %v136_v23, %v94_v27 }
  0xc6   :  { %v99_v31 = vsel %vm98_vm2, %v136_v23, %v95_v29 }
  0xc7   :  { %v104_v32 = vsel %vm101_vm3, %v103_v30, %v99_v31 }
  0xc8   :  { %107 = vst [vmem:[#allocation7] sm:$0x3] %v104_v32 }
  0xc9   :  { %118 = dma.vmem_to_hbm [thread:$0]  %s114_s26, 32, %s116_s2, [#allocation4]  }
  0xca   :  { %213 = dma.done.wait [#allocation4], 32  }
  0xcb   :  { %214 = vsyncadd [#allocation4], 4294967264 }
  0xcc   :  { %123 = vsyncpa [#allocation3], 1 }
  0xcd   :  { %124 = vsyncpa [#allocation6], 1 }
  0xce   :  { %125 = vsyncpa [#allocation4], 1 }

</bundles_post_ra>
